<compile_context>
chip_gen: v7x
topology: tpu7x:2x2x1
jax: 0.10.0
libtpu: 0.0.40
codegen_flags: <defaults>
</compile_context>

<pallas_src>
import functools

import jax
import jax.numpy as jnp
from jax.experimental import pallas as pl
from jax.experimental.pallas import tpu as pltpu

_VMEM_LIMIT_BYTES = 48 * 1024 * 1024      # fits v5e/v6e (128 MiB) and v7x (64 MiB)
_XP_SCRATCH_BYTES = 8 * 1024 * 1024       # budget for the per-chunk xp scratch


def _round_up(n, m):
    return ((n + m - 1) // m) * m


def _largest_divisor_leq(n, cap):
    cap = max(1, min(cap, n))
    for c in range(cap, 0, -1):
        if n % c == 0:
            return c
    return 1


# ---------------------------------------------------------------------------
# Fused kernel: per (batch-tile, time-chunk) grid step
#   1) xp[i] = x[i] @ Wx + (b_ih + b_hh)   (no h dependency, MXU, f32 scratch)
#   2) unrolled LSTM recurrence over the chunk, nsub interleaved batch chains
#   3) at the last time chunk: sigmoid(Linear(h_T)) via VPU reduce
# ---------------------------------------------------------------------------
def _lstm_disc_kernel(x_ref, wx_ref, b_ref, wh_ref, wo_ref, bo_ref, out_ref,
                      xp_sc, h_sc, c_sc, *, hidden, block_t, nsub, sub_b):
    H = hidden
    tc = pl.program_id(1)
    cd = wh_ref.dtype                      # MXU compute dtype (bf16 or f32)

    @pl.when(tc == 0)
    def _init():
        h_sc[...] = jnp.zeros_like(h_sc)
        c_sc[...] = jnp.zeros_like(c_sc)

    # ---- fused input projection for this time chunk ------------------------
    for i in range(block_t):
        xi = x_ref[i].astype(cd)                                   # (Bb, D)
        xp_sc[i] = (jnp.dot(xi, wx_ref[...],
                            preferred_element_type=jnp.float32)
                    + b_ref[...])                                  # (Bb, 4H) f32

    # ---- recurrence: nsub interleaved independent batch sub-chains ---------
    hs = [h_sc[j * sub_b:(j + 1) * sub_b, :] for j in range(nsub)]
    cs = [c_sc[j * sub_b:(j + 1) * sub_b, :] for j in range(nsub)]
    for i in range(block_t):
        for j in range(nsub):              # independent chains, same time step
            gates = (xp_sc[i, j * sub_b:(j + 1) * sub_b, :]
                     + jnp.dot(hs[j].astype(cd), wh_ref[...],
                               preferred_element_type=jnp.float32))
            # gate layout [i, f, o, g]: one tanh-based sigmoid over the 3H slab
            # (sigmoid(x) = 0.5*tanh(0.5*x) + 0.5 -> 1 EUP push, not exp+recip)
            sig = 0.5 * jnp.tanh(0.5 * gates[:, :3 * H]) + 0.5
            g_g = jnp.tanh(gates[:, 3 * H:])
            i_g = sig[:, 0 * H:1 * H]
            f_g = sig[:, 1 * H:2 * H]
            o_g = sig[:, 2 * H:3 * H]
            cs[j] = f_g * cs[j] + i_g * g_g
            hs[j] = o_g * jnp.tanh(cs[j])
    for j in range(nsub):
        h_sc[j * sub_b:(j + 1) * sub_b, :] = hs[j]
        c_sc[j * sub_b:(j + 1) * sub_b, :] = cs[j]

    # ---- Linear(H -> 1) + sigmoid head at the last time chunk --------------
    @pl.when(tc == pl.num_programs(1) - 1)
    def _head():
        h = h_sc[...]
        logit = jnp.sum(h * wo_ref[...], axis=-1, keepdims=True) + bo_ref[...]
        out_ref[...] = jax.nn.sigmoid(logit).astype(out_ref.dtype)


# ---------------------------------------------------------------------------
# Parameter handling (PyTorch layout in, kernel layout out)
# ---------------------------------------------------------------------------
def init_torch_params(key, input_dim, hidden_dim):
    """Deterministic init with nn.LSTM / nn.Linear parameter shapes & gate order."""
    H = hidden_dim
    k = 1.0 / jnp.sqrt(hidden_dim)
    ks = jax.random.split(key, 6)
    w_ih = jax.random.uniform(ks[0], (4 * H, input_dim), jnp.float32, -k, k)
    w_hh = jax.random.uniform(ks[1], (4 * H, H), jnp.float32, -k, k)
    b_ih = jax.random.uniform(ks[2], (4 * H,), jnp.float32, -k, k)
    b_hh = jax.random.uniform(ks[3], (4 * H,), jnp.float32, -k, k)
    w_out = jax.random.uniform(ks[4], (1, H), jnp.float32, -k, k)
    b_out = jax.random.uniform(ks[5], (1,), jnp.float32, -k, k)
    return (w_ih, w_hh, b_ih, b_hh, w_out, b_out)


def _prepare_kernel_params(torch_params, compute_dtype):
    """Reorder gates [i,f,g,o]->[i,f,o,g], transpose, fuse biases, cast weights."""
    w_ih, w_hh, b_ih, b_hh, w_out, b_out = torch_params
    H = w_hh.shape[1]

    def reorder(w):  # leading-axis gate blocks: [i,f,g,o] -> [i,f,o,g]
        return jnp.concatenate([w[:2 * H], w[3 * H:], w[2 * H:3 * H]], axis=0)

    wx = reorder(w_ih).T.astype(compute_dtype)                  # (D, 4H)
    wh = reorder(w_hh).T.astype(compute_dtype)                  # (H, 4H)
    b = (reorder(b_ih) + reorder(b_hh)).reshape(1, 4 * H).astype(jnp.float32)
    wo = w_out.reshape(1, H).astype(jnp.float32)                # (1, H) VPU head row
    bo = b_out.reshape(1, 1).astype(jnp.float32)                # (1, 1)
    return wx, wh, b, wo, bo


# ---------------------------------------------------------------------------
# Wrapper
# ---------------------------------------------------------------------------
def lstm_discriminator(x, torch_params, *, compute_dtype=jnp.bfloat16,
                       block_t=None, block_b=None):
    """x: (B, T, D) float32 -> (B, 1) float32 (sigmoid of Linear(last hidden))."""
    B, T, D = x.shape
    H = torch_params[1].shape[1]
    G = 4 * H
    wx, wh, b, wo, bo = _prepare_kernel_params(torch_params, compute_dtype)

    # Batch tile: full sublanes (multiple of 8), at most 128; pad batch if needed.
    Bb = block_b if block_b is not None else min(128, _round_up(B, 8))
    B_pad = _round_up(B, Bb)

    # Time chunk: divisor of T (exact recurrence, no time padding), capped at 16
    # and by the xp VMEM scratch budget (keeps v7x's 64 MiB comfortable).
    if block_t is None:
        per_step_bytes = Bb * G * 4
        tt_cap = max(1, min(16, _XP_SCRATCH_BYTES // per_step_bytes))
        Tt = _largest_divisor_leq(T, tt_cap)
    else:
        Tt = block_t

    nsub = 2 if (Bb % 16 == 0) else 1       # interleaved batch sub-chains
    sub_b = Bb // nsub

    xb = x if B_pad == B else jnp.pad(x, ((0, B_pad - B), (0, 0), (0, 0)))
    xt = jnp.transpose(xb, (1, 0, 2))       # (T, B_pad, D): one cheap relayout

    kernel = functools.partial(_lstm_disc_kernel, hidden=H, block_t=Tt,
                               nsub=nsub, sub_b=sub_b)
    out = pl.pallas_call(
        kernel,
        out_shape=jax.ShapeDtypeStruct((B_pad, 1), jnp.float32),
        grid_spec=pltpu.PrefetchScalarGridSpec(
            num_scalar_prefetch=0,
            grid=(B_pad // Bb, T // Tt),
            in_specs=[
                pl.BlockSpec((Tt, Bb, D), lambda bb, tc: (tc, bb, 0)),  # x chunk
                pl.BlockSpec((D, G), lambda bb, tc: (0, 0)),            # W_ih^T
                pl.BlockSpec((1, G), lambda bb, tc: (0, 0)),            # fused bias
                pl.BlockSpec((H, G), lambda bb, tc: (0, 0)),            # W_hh^T
                pl.BlockSpec((1, H), lambda bb, tc: (0, 0)),            # W_out row
                pl.BlockSpec((1, 1), lambda bb, tc: (0, 0)),            # b_out
            ],
            out_specs=pl.BlockSpec((Bb, 1), lambda bb, tc: (bb, 0)),
            scratch_shapes=[
                pltpu.VMEM((Tt, Bb, G), jnp.float32),   # xp chunk (f32, no trunc)
                pltpu.VMEM((Bb, H), jnp.float32),       # h state
                pltpu.VMEM((Bb, H), jnp.float32),       # c state
            ],
        ),
        compiler_params=pltpu.CompilerParams(
            dimension_semantics=("parallel", "arbitrary"),
            vmem_limit_bytes=_VMEM_LIMIT_BYTES),
    )(xt, wx, b, wh, wo, bo)
    return out[:B]


# ---------------------------------------------------------------------------
# Pure-JAX reference, identical math to the PyTorch module (PyTorch gate order)
# ---------------------------------------------------------------------------
def reference_forward(x, torch_params):
    w_ih, w_hh, b_ih, b_hh, w_out, b_out = torch_params
    H = w_hh.shape[1]
    B = x.shape[0]
    h = jnp.zeros((B, H), jnp.float32)
    c = jnp.zeros((B, H), jnp.float32)

    def step(carry, x_t):
        h, c = carry
        gates = x_t @ w_ih.T + h @ w_hh.T + b_ih + b_hh
        i_g = jax.nn.sigmoid(gates[:, 0 * H:1 * H])
        f_g = jax.nn.sigmoid(gates[:, 1 * H:2 * H])
        g_g = jnp.tanh(gates[:, 2 * H:3 * H])
        o_g = jax.nn.sigmoid(gates[:, 3 * H:4 * H])
        c_new = f_g * c + i_g * g_g
        h_new = o_g * jnp.tanh(c_new)
        return (h_new, c_new), None

    (h, c), _ = jax.lax.scan(step, (h, c), jnp.transpose(x, (1, 0, 2)))
    return jax.nn.sigmoid(h @ w_out.T + b_out)


if __name__ == "__main__":
    B, T, D, H = 2, 8, 4, 32
    key = jax.random.PRNGKey(0)
    kx, kp = jax.random.split(key)
    x = jax.random.normal(kx, (B, T, D), jnp.float32)
    params = init_torch_params(kp, D, H)

    ref = reference_forward(x, params)

    # Exact-precision path (f32 MXU operands) — tight tolerance.
    out_f32 = jax.block_until_ready(
        lstm_discriminator(x, params, compute_dtype=jnp.float32))
    assert out_f32.shape == (B, 1)
    assert jnp.allclose(out_f32, ref, atol=2e-4, rtol=1e-3), (out_f32, ref)

    # Default fast path (bf16 MXU operands, f32 accumulation & gate math).
    out_bf16 = jax.block_until_ready(
        lstm_discriminator(x, params, compute_dtype=jnp.bfloat16))
    assert out_bf16.shape == (B, 1)
    assert jnp.allclose(out_bf16, ref, atol=3e-2, rtol=0.0), (out_bf16, ref)

    print("KERNEL_OK")
</pallas_src>

<mosaic_0001>
module attributes {stable_mosaic.version = 11 : i64} {
  func.func @_lstm_disc_kernel(%arg0: i32, %arg1: i32, %arg2: memref<8x8x4xf32, #tpu.memory_space<vmem>>, %arg3: memref<4x128xf32, #tpu.memory_space<vmem>>, %arg4: memref<1x128xf32, #tpu.memory_space<vmem>>, %arg5: memref<32x128xf32, #tpu.memory_space<vmem>>, %arg6: memref<1x32xf32, #tpu.memory_space<vmem>>, %arg7: memref<1x1xf32, #tpu.memory_space<vmem>>, %arg8: memref<8x1xf32, #tpu.memory_space<vmem>>, %arg9: memref<8x8x128xf32, #tpu.memory_space<vmem>>, %arg10: memref<8x32xf32, #tpu.memory_space<vmem>>, %arg11: memref<8x32xf32, #tpu.memory_space<vmem>>) attributes {dimension_semantics = [#tpu.dimension_semantics<parallel>, #tpu.dimension_semantics<arbitrary>], iteration_bounds = array<i64: 1, 1>, scalar_prefetch = 0 : i64, scratch_operands = 3 : i64, tpu.core_type = #tpu.core_type<tc>, window_params = [{transform_indices = @transform_0, window_bounds = array<i64: 8, 8, 4>}, {pipeline_mode = #tpu.pipeline_mode<synchronous>, transform_indices = @transform_1, window_bounds = array<i64: 4, 128>}, {pipeline_mode = #tpu.pipeline_mode<synchronous>, transform_indices = @transform_2, window_bounds = array<i64: 1, 128>}, {pipeline_mode = #tpu.pipeline_mode<synchronous>, transform_indices = @transform_3, window_bounds = array<i64: 32, 128>}, {pipeline_mode = #tpu.pipeline_mode<synchronous>, transform_indices = @transform_4, window_bounds = array<i64: 1, 32>}, {pipeline_mode = #tpu.pipeline_mode<synchronous>, transform_indices = @transform_5, window_bounds = array<i64: 1, 1>}, {transform_indices = @transform_6, window_bounds = array<i64: 8, 1>}]} {
    %c0_i32 = arith.constant 0 : i32
    %0 = arith.cmpi eq, %arg1, %c0_i32 : i32
    %1 = arith.extui %0 : i1 to i32
    %c0_i32_0 = arith.constant 0 : i32
    %2 = arith.cmpi ne, %1, %c0_i32_0 : i32
    scf.if %2 {
      %cst_162 = arith.constant 0.000000e+00 : f32
      %274 = vector.broadcast %cst_162 : f32 to vector<8x32xf32>
      %c0_163 = arith.constant 0 : index
      %c0_164 = arith.constant 0 : index
      %275 = vector.load %arg10[%c0_163, %c0_164] : memref<8x32xf32, #tpu.memory_space<vmem>>, vector<8x32xf32>
      tpu.vector_store %arg10[%c0_163, %c0_164], %274 {strides = array<i32>} : memref<8x32xf32, #tpu.memory_space<vmem>>, vector<8x32xf32>,
      %cst_165 = arith.constant 0.000000e+00 : f32
      %276 = vector.broadcast %cst_165 : f32 to vector<8x32xf32>
      %c0_166 = arith.constant 0 : index
      %c0_167 = arith.constant 0 : index
      %277 = vector.load %arg11[%c0_166, %c0_167] : memref<8x32xf32, #tpu.memory_space<vmem>>, vector<8x32xf32>
      tpu.vector_store %arg11[%c0_166, %c0_167], %276 {strides = array<i32>} : memref<8x32xf32, #tpu.memory_space<vmem>>, vector<8x32xf32>,
    } else {
    }
    %c0 = arith.constant 0 : index
    %c0_1 = arith.constant 0 : index
    %c0_2 = arith.constant 0 : index
    %3 = vector.load %arg2[%c0, %c0_1, %c0_2] : memref<8x8x4xf32, #tpu.memory_space<vmem>>, vector<1x8x4xf32>
    %4 = vector.shape_cast %3 : vector<1x8x4xf32> to vector<8x4xf32>
    %c0_3 = arith.constant 0 : index
    %c0_4 = arith.constant 0 : index
    %5 = vector.load %arg3[%c0_3, %c0_4] : memref<4x128xf32, #tpu.memory_space<vmem>>, vector<4x128xf32>
    %cst = arith.constant dense<0.000000e+00> : vector<8x128xf32>
    %6 = tpu.matmul %4, %5, %cst {dimension_numbers = #tpu.dot_dimension_numbers<[1], [0], [0], [1], [0, 0, 1, 1], [], []>} : vector<8x4xf32>, vector<4x128xf32>, vector<8x128xf32> -> vector<8x128xf32>
    %c0_5 = arith.constant 0 : index
    %c0_6 = arith.constant 0 : index
    %7 = vector.load %arg4[%c0_5, %c0_6] : memref<1x128xf32, #tpu.memory_space<vmem>>, vector<1x128xf32>
    %8 = vector.broadcast %7 : vector<1x128xf32> to vector<8x128xf32>
    %9 = arith.addf %6, %8 : vector<8x128xf32>
    %c0_7 = arith.constant 0 : index
    %c0_8 = arith.constant 0 : index
    %c0_9 = arith.constant 0 : index
    %10 = vector.load %arg9[%c0_7, %c0_8, %c0_9] : memref<8x8x128xf32, #tpu.memory_space<vmem>>, vector<1x8x128xf32>
    %11 = vector.shape_cast %10 : vector<1x8x128xf32> to vector<8x128xf32>
    %12 = vector.shape_cast %9 : vector<8x128xf32> to vector<1x8x128xf32>
    tpu.vector_store %arg9[%c0_7, %c0_8, %c0_9], %12 {strides = array<i32>} : memref<8x8x128xf32, #tpu.memory_space<vmem>>, vector<1x8x128xf32>,
    %c1 = arith.constant 1 : index
    %c0_10 = arith.constant 0 : index
    %c0_11 = arith.constant 0 : index
    %13 = vector.load %arg2[%c1, %c0_10, %c0_11] : memref<8x8x4xf32, #tpu.memory_space<vmem>>, vector<1x8x4xf32>
    %14 = vector.shape_cast %13 : vector<1x8x4xf32> to vector<8x4xf32>
    %c0_12 = arith.constant 0 : index
    %c0_13 = arith.constant 0 : index
    %15 = vector.load %arg3[%c0_12, %c0_13] : memref<4x128xf32, #tpu.memory_space<vmem>>, vector<4x128xf32>
    %cst_14 = arith.constant dense<0.000000e+00> : vector<8x128xf32>
    %16 = tpu.matmul %14, %15, %cst_14 {dimension_numbers = #tpu.dot_dimension_numbers<[1], [0], [0], [1], [0, 0, 1, 1], [], []>} : vector<8x4xf32>, vector<4x128xf32>, vector<8x128xf32> -> vector<8x128xf32>
    %c0_15 = arith.constant 0 : index
    %c0_16 = arith.constant 0 : index
    %17 = vector.load %arg4[%c0_15, %c0_16] : memref<1x128xf32, #tpu.memory_space<vmem>>, vector<1x128xf32>
    %18 = vector.broadcast %17 : vector<1x128xf32> to vector<8x128xf32>
    %19 = arith.addf %16, %18 : vector<8x128xf32>
    %c1_17 = arith.constant 1 : index
    %c0_18 = arith.constant 0 : index
    %c0_19 = arith.constant 0 : index
    %20 = vector.load %arg9[%c1_17, %c0_18, %c0_19] : memref<8x8x128xf32, #tpu.memory_space<vmem>>, vector<1x8x128xf32>
    %21 = vector.shape_cast %20 : vector<1x8x128xf32> to vector<8x128xf32>
    %22 = vector.shape_cast %19 : vector<8x128xf32> to vector<1x8x128xf32>
    tpu.vector_store %arg9[%c1_17, %c0_18, %c0_19], %22 {strides = array<i32>} : memref<8x8x128xf32, #tpu.memory_space<vmem>>, vector<1x8x128xf32>,
    %c2 = arith.constant 2 : index
    %c0_20 = arith.constant 0 : index
    %c0_21 = arith.constant 0 : index
    %23 = vector.load %arg2[%c2, %c0_20, %c0_21] : memref<8x8x4xf32, #tpu.memory_space<vmem>>, vector<1x8x4xf32>
    %24 = vector.shape_cast %23 : vector<1x8x4xf32> to vector<8x4xf32>
    %c0_22 = arith.constant 0 : index
    %c0_23 = arith.constant 0 : index
    %25 = vector.load %arg3[%c0_22, %c0_23] : memref<4x128xf32, #tpu.memory_space<vmem>>, vector<4x128xf32>
    %cst_24 = arith.constant dense<0.000000e+00> : vector<8x128xf32>
    %26 = tpu.matmul %24, %25, %cst_24 {dimension_numbers = #tpu.dot_dimension_numbers<[1], [0], [0], [1], [0, 0, 1, 1], [], []>} : vector<8x4xf32>, vector<4x128xf32>, vector<8x128xf32> -> vector<8x128xf32>
    %c0_25 = arith.constant 0 : index
    %c0_26 = arith.constant 0 : index
    %27 = vector.load %arg4[%c0_25, %c0_26] : memref<1x128xf32, #tpu.memory_space<vmem>>, vector<1x128xf32>
    %28 = vector.broadcast %27 : vector<1x128xf32> to vector<8x128xf32>
    %29 = arith.addf %26, %28 : vector<8x128xf32>
    %c2_27 = arith.constant 2 : index
    %c0_28 = arith.constant 0 : index
    %c0_29 = arith.constant 0 : index
    %30 = vector.load %arg9[%c2_27, %c0_28, %c0_29] : memref<8x8x128xf32, #tpu.memory_space<vmem>>, vector<1x8x128xf32>
    %31 = vector.shape_cast %30 : vector<1x8x128xf32> to vector<8x128xf32>
    %32 = vector.shape_cast %29 : vector<8x128xf32> to vector<1x8x128xf32>
    tpu.vector_store %arg9[%c2_27, %c0_28, %c0_29], %32 {strides = array<i32>} : memref<8x8x128xf32, #tpu.memory_space<vmem>>, vector<1x8x128xf32>,
    %c3 = arith.constant 3 : index
    %c0_30 = arith.constant 0 : index
    %c0_31 = arith.constant 0 : index
    %33 = vector.load %arg2[%c3, %c0_30, %c0_31] : memref<8x8x4xf32, #tpu.memory_space<vmem>>, vector<1x8x4xf32>
    %34 = vector.shape_cast %33 : vector<1x8x4xf32> to vector<8x4xf32>
    %c0_32 = arith.constant 0 : index
    %c0_33 = arith.constant 0 : index
    %35 = vector.load %arg3[%c0_32, %c0_33] : memref<4x128xf32, #tpu.memory_space<vmem>>, vector<4x128xf32>
    %cst_34 = arith.constant dense<0.000000e+00> : vector<8x128xf32>
    %36 = tpu.matmul %34, %35, %cst_34 {dimension_numbers = #tpu.dot_dimension_numbers<[1], [0], [0], [1], [0, 0, 1, 1], [], []>} : vector<8x4xf32>, vector<4x128xf32>, vector<8x128xf32> -> vector<8x128xf32>
    %c0_35 = arith.constant 0 : index
    %c0_36 = arith.constant 0 : index
    %37 = vector.load %arg4[%c0_35, %c0_36] : memref<1x128xf32, #tpu.memory_space<vmem>>, vector<1x128xf32>
    %38 = vector.broadcast %37 : vector<1x128xf32> to vector<8x128xf32>
    %39 = arith.addf %36, %38 : vector<8x128xf32>
    %c3_37 = arith.constant 3 : index
    %c0_38 = arith.constant 0 : index
    %c0_39 = arith.constant 0 : index
    %40 = vector.load %arg9[%c3_37, %c0_38, %c0_39] : memref<8x8x128xf32, #tpu.memory_space<vmem>>, vector<1x8x128xf32>
    %41 = vector.shape_cast %40 : vector<1x8x128xf32> to vector<8x128xf32>
    %42 = vector.shape_cast %39 : vector<8x128xf32> to vector<1x8x128xf32>
    tpu.vector_store %arg9[%c3_37, %c0_38, %c0_39], %42 {strides = array<i32>} : memref<8x8x128xf32, #tpu.memory_space<vmem>>, vector<1x8x128xf32>,
    %c4 = arith.constant 4 : index
    %c0_40 = arith.constant 0 : index
    %c0_41 = arith.constant 0 : index
    %43 = vector.load %arg2[%c4, %c0_40, %c0_41] : memref<8x8x4xf32, #tpu.memory_space<vmem>>, vector<1x8x4xf32>
    %44 = vector.shape_cast %43 : vector<1x8x4xf32> to vector<8x4xf32>
    %c0_42 = arith.constant 0 : index
    %c0_43 = arith.constant 0 : index
    %45 = vector.load %arg3[%c0_42, %c0_43] : memref<4x128xf32, #tpu.memory_space<vmem>>, vector<4x128xf32>
    %cst_44 = arith.constant dense<0.000000e+00> : vector<8x128xf32>
    %46 = tpu.matmul %44, %45, %cst_44 {dimension_numbers = #tpu.dot_dimension_numbers<[1], [0], [0], [1], [0, 0, 1, 1], [], []>} : vector<8x4xf32>, vector<4x128xf32>, vector<8x128xf32> -> vector<8x128xf32>
    %c0_45 = arith.constant 0 : index
    %c0_46 = arith.constant 0 : index
    %47 = vector.load %arg4[%c0_45, %c0_46] : memref<1x128xf32, #tpu.memory_space<vmem>>, vector<1x128xf32>
    %48 = vector.broadcast %47 : vector<1x128xf32> to vector<8x128xf32>
    %49 = arith.addf %46, %48 : vector<8x128xf32>
    %c4_47 = arith.constant 4 : index
    %c0_48 = arith.constant 0 : index
    %c0_49 = arith.constant 0 : index
    %50 = vector.load %arg9[%c4_47, %c0_48, %c0_49] : memref<8x8x128xf32, #tpu.memory_space<vmem>>, vector<1x8x128xf32>
    %51 = vector.shape_cast %50 : vector<1x8x128xf32> to vector<8x128xf32>
    %52 = vector.shape_cast %49 : vector<8x128xf32> to vector<1x8x128xf32>
    tpu.vector_store %arg9[%c4_47, %c0_48, %c0_49], %52 {strides = array<i32>} : memref<8x8x128xf32, #tpu.memory_space<vmem>>, vector<1x8x128xf32>,
    %c5 = arith.constant 5 : index
    %c0_50 = arith.constant 0 : index
    %c0_51 = arith.constant 0 : index
    %53 = vector.load %arg2[%c5, %c0_50, %c0_51] : memref<8x8x4xf32, #tpu.memory_space<vmem>>, vector<1x8x4xf32>
    %54 = vector.shape_cast %53 : vector<1x8x4xf32> to vector<8x4xf32>
    %c0_52 = arith.constant 0 : index
    %c0_53 = arith.constant 0 : index
    %55 = vector.load %arg3[%c0_52, %c0_53] : memref<4x128xf32, #tpu.memory_space<vmem>>, vector<4x128xf32>
    %cst_54 = arith.constant dense<0.000000e+00> : vector<8x128xf32>
    %56 = tpu.matmul %54, %55, %cst_54 {dimension_numbers = #tpu.dot_dimension_numbers<[1], [0], [0], [1], [0, 0, 1, 1], [], []>} : vector<8x4xf32>, vector<4x128xf32>, vector<8x128xf32> -> vector<8x128xf32>
    %c0_55 = arith.constant 0 : index
    %c0_56 = arith.constant 0 : index
    %57 = vector.load %arg4[%c0_55, %c0_56] : memref<1x128xf32, #tpu.memory_space<vmem>>, vector<1x128xf32>
    %58 = vector.broadcast %57 : vector<1x128xf32> to vector<8x128xf32>
    %59 = arith.addf %56, %58 : vector<8x128xf32>
    %c5_57 = arith.constant 5 : index
    %c0_58 = arith.constant 0 : index
    %c0_59 = arith.constant 0 : index
    %60 = vector.load %arg9[%c5_57, %c0_58, %c0_59] : memref<8x8x128xf32, #tpu.memory_space<vmem>>, vector<1x8x128xf32>
    %61 = vector.shape_cast %60 : vector<1x8x128xf32> to vector<8x128xf32>
    %62 = vector.shape_cast %59 : vector<8x128xf32> to vector<1x8x128xf32>
    tpu.vector_store %arg9[%c5_57, %c0_58, %c0_59], %62 {strides = array<i32>} : memref<8x8x128xf32, #tpu.memory_space<vmem>>, vector<1x8x128xf32>,
    %c6 = arith.constant 6 : index
    %c0_60 = arith.constant 0 : index
    %c0_61 = arith.constant 0 : index
    %63 = vector.load %arg2[%c6, %c0_60, %c0_61] : memref<8x8x4xf32, #tpu.memory_space<vmem>>, vector<1x8x4xf32>
    %64 = vector.shape_cast %63 : vector<1x8x4xf32> to vector<8x4xf32>
    %c0_62 = arith.constant 0 : index
    %c0_63 = arith.constant 0 : index
    %65 = vector.load %arg3[%c0_62, %c0_63] : memref<4x128xf32, #tpu.memory_space<vmem>>, vector<4x128xf32>
    %cst_64 = arith.constant dense<0.000000e+00> : vector<8x128xf32>
    %66 = tpu.matmul %64, %65, %cst_64 {dimension_numbers = #tpu.dot_dimension_numbers<[1], [0], [0], [1], [0, 0, 1, 1], [], []>} : vector<8x4xf32>, vector<4x128xf32>, vector<8x128xf32> -> vector<8x128xf32>
    %c0_65 = arith.constant 0 : index
    %c0_66 = arith.constant 0 : index
    %67 = vector.load %arg4[%c0_65, %c0_66] : memref<1x128xf32, #tpu.memory_space<vmem>>, vector<1x128xf32>
    %68 = vector.broadcast %67 : vector<1x128xf32> to vector<8x128xf32>
    %69 = arith.addf %66, %68 : vector<8x128xf32>
    %c6_67 = arith.constant 6 : index
    %c0_68 = arith.constant 0 : index
    %c0_69 = arith.constant 0 : index
    %70 = vector.load %arg9[%c6_67, %c0_68, %c0_69] : memref<8x8x128xf32, #tpu.memory_space<vmem>>, vector<1x8x128xf32>
    %71 = vector.shape_cast %70 : vector<1x8x128xf32> to vector<8x128xf32>
    %72 = vector.shape_cast %69 : vector<8x128xf32> to vector<1x8x128xf32>
    tpu.vector_store %arg9[%c6_67, %c0_68, %c0_69], %72 {strides = array<i32>} : memref<8x8x128xf32, #tpu.memory_space<vmem>>, vector<1x8x128xf32>,
    %c7 = arith.constant 7 : index
    %c0_70 = arith.constant 0 : index
    %c0_71 = arith.constant 0 : index
    %73 = vector.load %arg2[%c7, %c0_70, %c0_71] : memref<8x8x4xf32, #tpu.memory_space<vmem>>, vector<1x8x4xf32>
    %74 = vector.shape_cast %73 : vector<1x8x4xf32> to vector<8x4xf32>
    %c0_72 = arith.constant 0 : index
    %c0_73 = arith.constant 0 : index
    %75 = vector.load %arg3[%c0_72, %c0_73] : memref<4x128xf32, #tpu.memory_space<vmem>>, vector<4x128xf32>
    %cst_74 = arith.constant dense<0.000000e+00> : vector<8x128xf32>
    %76 = tpu.matmul %74, %75, %cst_74 {dimension_numbers = #tpu.dot_dimension_numbers<[1], [0], [0], [1], [0, 0, 1, 1], [], []>} : vector<8x4xf32>, vector<4x128xf32>, vector<8x128xf32> -> vector<8x128xf32>
    %c0_75 = arith.constant 0 : index
    %c0_76 = arith.constant 0 : index
    %77 = vector.load %arg4[%c0_75, %c0_76] : memref<1x128xf32, #tpu.memory_space<vmem>>, vector<1x128xf32>
    %78 = vector.broadcast %77 : vector<1x128xf32> to vector<8x128xf32>
    %79 = arith.addf %76, %78 : vector<8x128xf32>
    %c7_77 = arith.constant 7 : index
    %c0_78 = arith.constant 0 : index
    %c0_79 = arith.constant 0 : index
    %80 = vector.load %arg9[%c7_77, %c0_78, %c0_79] : memref<8x8x128xf32, #tpu.memory_space<vmem>>, vector<1x8x128xf32>
    %81 = vector.shape_cast %80 : vector<1x8x128xf32> to vector<8x128xf32>
    %82 = vector.shape_cast %79 : vector<8x128xf32> to vector<1x8x128xf32>
    tpu.vector_store %arg9[%c7_77, %c0_78, %c0_79], %82 {strides = array<i32>} : memref<8x8x128xf32, #tpu.memory_space<vmem>>, vector<1x8x128xf32>,
    %c0_80 = arith.constant 0 : index
    %c0_81 = arith.constant 0 : index
    %83 = vector.load %arg10[%c0_80, %c0_81] : memref<8x32xf32, #tpu.memory_space<vmem>>, vector<8x32xf32>
    %c0_82 = arith.constant 0 : index
    %c0_83 = arith.constant 0 : index
    %84 = vector.load %arg11[%c0_82, %c0_83] : memref<8x32xf32, #tpu.memory_space<vmem>>, vector<8x32xf32>
    %c0_84 = arith.constant 0 : index
    %c0_85 = arith.constant 0 : index
    %c0_86 = arith.constant 0 : index
    %85 = vector.load %arg9[%c0_84, %c0_85, %c0_86] : memref<8x8x128xf32, #tpu.memory_space<vmem>>, vector<1x8x128xf32>
    %86 = vector.shape_cast %85 : vector<1x8x128xf32> to vector<8x128xf32>
    %c0_87 = arith.constant 0 : index
    %c0_88 = arith.constant 0 : index
    %87 = vector.load %arg5[%c0_87, %c0_88] : memref<32x128xf32, #tpu.memory_space<vmem>>, vector<32x128xf32>
    %cst_89 = arith.constant dense<0.000000e+00> : vector<8x128xf32>
    %88 = tpu.matmul %83, %87, %cst_89 {dimension_numbers = #tpu.dot_dimension_numbers<[1], [0], [0], [1], [0, 0, 1, 1], [], []>} : vector<8x32xf32>, vector<32x128xf32>, vector<8x128xf32> -> vector<8x128xf32>
    %89 = arith.addf %86, %88 : vector<8x128xf32>
    %90 = vector.extract_strided_slice %89 {offsets = [0, 0], sizes = [8, 96], strides = [1, 1]} : vector<8x128xf32> to vector<8x96xf32>
    %cst_90 = arith.constant 5.000000e-01 : f32
    %91 = vector.broadcast %cst_90 : f32 to vector<8x96xf32>
    %92 = arith.mulf %91, %90 : vector<8x96xf32>
    %93 = math.tanh %92 : vector<8x96xf32>
    %cst_91 = arith.constant 5.000000e-01 : f32
    %94 = vector.broadcast %cst_91 : f32 to vector<8x96xf32>
    %95 = arith.mulf %94, %93 : vector<8x96xf32>
    %cst_92 = arith.constant 5.000000e-01 : f32
    %96 = vector.broadcast %cst_92 : f32 to vector<8x96xf32>
    %97 = arith.addf %95, %96 : vector<8x96xf32>
    %98 = vector.extract_strided_slice %89 {offsets = [0, 96], sizes = [8, 32], strides = [1, 1]} : vector<8x128xf32> to vector<8x32xf32>
    %99 = math.tanh %98 : vector<8x32xf32>
    %100 = vector.extract_strided_slice %97 {offsets = [0, 0], sizes = [8, 32], strides = [1, 1]} : vector<8x96xf32> to vector<8x32xf32>
    %101 = vector.extract_strided_slice %97 {offsets = [0, 32], sizes = [8, 32], strides = [1, 1]} : vector<8x96xf32> to vector<8x32xf32>
    %102 = vector.extract_strided_slice %97 {offsets = [0, 64], sizes = [8, 32], strides = [1, 1]} : vector<8x96xf32> to vector<8x32xf32>
    %103 = arith.mulf %101, %84 : vector<8x32xf32>
    %104 = arith.mulf %100, %99 : vector<8x32xf32>
    %105 = arith.addf %103, %104 : vector<8x32xf32>
    %106 = math.tanh %105 : vector<8x32xf32>
    %107 = arith.mulf %102, %106 : vector<8x32xf32>
    %c1_93 = arith.constant 1 : index
    %c0_94 = arith.constant 0 : index
    %c0_95 = arith.constant 0 : index
    %108 = vector.load %arg9[%c1_93, %c0_94, %c0_95] : memref<8x8x128xf32, #tpu.memory_space<vmem>>, vector<1x8x128xf32>
    %109 = vector.shape_cast %108 : vector<1x8x128xf32> to vector<8x128xf32>
    %c0_96 = arith.constant 0 : index
    %c0_97 = arith.constant 0 : index
    %110 = vector.load %arg5[%c0_96, %c0_97] : memref<32x128xf32, #tpu.memory_space<vmem>>, vector<32x128xf32>
    %cst_98 = arith.constant dense<0.000000e+00> : vector<8x128xf32>
    %111 = tpu.matmul %107, %110, %cst_98 {dimension_numbers = #tpu.dot_dimension_numbers<[1], [0], [0], [1], [0, 0, 1, 1], [], []>} : vector<8x32xf32>, vector<32x128xf32>, vector<8x128xf32> -> vector<8x128xf32>
    %112 = arith.addf %109, %111 : vector<8x128xf32>
    %113 = vector.extract_strided_slice %112 {offsets = [0, 0], sizes = [8, 96], strides = [1, 1]} : vector<8x128xf32> to vector<8x96xf32>
    %cst_99 = arith.constant 5.000000e-01 : f32
    %114 = vector.broadcast %cst_99 : f32 to vector<8x96xf32>
    %115 = arith.mulf %114, %113 : vector<8x96xf32>
    %116 = math.tanh %115 : vector<8x96xf32>
    %cst_100 = arith.constant 5.000000e-01 : f32
    %117 = vector.broadcast %cst_100 : f32 to vector<8x96xf32>
    %118 = arith.mulf %117, %116 : vector<8x96xf32>
    %cst_101 = arith.constant 5.000000e-01 : f32
    %119 = vector.broadcast %cst_101 : f32 to vector<8x96xf32>
    %120 = arith.addf %118, %119 : vector<8x96xf32>
    %121 = vector.extract_strided_slice %112 {offsets = [0, 96], sizes = [8, 32], strides = [1, 1]} : vector<8x128xf32> to vector<8x32xf32>
    %122 = math.tanh %121 : vector<8x32xf32>
    %123 = vector.extract_strided_slice %120 {offsets = [0, 0], sizes = [8, 32], strides = [1, 1]} : vector<8x96xf32> to vector<8x32xf32>
    %124 = vector.extract_strided_slice %120 {offsets = [0, 32], sizes = [8, 32], strides = [1, 1]} : vector<8x96xf32> to vector<8x32xf32>
    %125 = vector.extract_strided_slice %120 {offsets = [0, 64], sizes = [8, 32], strides = [1, 1]} : vector<8x96xf32> to vector<8x32xf32>
    %126 = arith.mulf %124, %105 : vector<8x32xf32>
    %127 = arith.mulf %123, %122 : vector<8x32xf32>
    %128 = arith.addf %126, %127 : vector<8x32xf32>
    %129 = math.tanh %128 : vector<8x32xf32>
    %130 = arith.mulf %125, %129 : vector<8x32xf32>
    %c2_102 = arith.constant 2 : index
    %c0_103 = arith.constant 0 : index
    %c0_104 = arith.constant 0 : index
    %131 = vector.load %arg9[%c2_102, %c0_103, %c0_104] : memref<8x8x128xf32, #tpu.memory_space<vmem>>, vector<1x8x128xf32>
    %132 = vector.shape_cast %131 : vector<1x8x128xf32> to vector<8x128xf32>
    %c0_105 = arith.constant 0 : index
    %c0_106 = arith.constant 0 : index
    %133 = vector.load %arg5[%c0_105, %c0_106] : memref<32x128xf32, #tpu.memory_space<vmem>>, vector<32x128xf32>
    %cst_107 = arith.constant dense<0.000000e+00> : vector<8x128xf32>
    %134 = tpu.matmul %130, %133, %cst_107 {dimension_numbers = #tpu.dot_dimension_numbers<[1], [0], [0], [1], [0, 0, 1, 1], [], []>} : vector<8x32xf32>, vector<32x128xf32>, vector<8x128xf32> -> vector<8x128xf32>
    %135 = arith.addf %132, %134 : vector<8x128xf32>
    %136 = vector.extract_strided_slice %135 {offsets = [0, 0], sizes = [8, 96], strides = [1, 1]} : vector<8x128xf32> to vector<8x96xf32>
    %cst_108 = arith.constant 5.000000e-01 : f32
    %137 = vector.broadcast %cst_108 : f32 to vector<8x96xf32>
    %138 = arith.mulf %137, %136 : vector<8x96xf32>
    %139 = math.tanh %138 : vector<8x96xf32>
    %cst_109 = arith.constant 5.000000e-01 : f32
    %140 = vector.broadcast %cst_109 : f32 to vector<8x96xf32>
    %141 = arith.mulf %140, %139 : vector<8x96xf32>
    %cst_110 = arith.constant 5.000000e-01 : f32
    %142 = vector.broadcast %cst_110 : f32 to vector<8x96xf32>
    %143 = arith.addf %141, %142 : vector<8x96xf32>
    %144 = vector.extract_strided_slice %135 {offsets = [0, 96], sizes = [8, 32], strides = [1, 1]} : vector<8x128xf32> to vector<8x32xf32>
    %145 = math.tanh %144 : vector<8x32xf32>
    %146 = vector.extract_strided_slice %143 {offsets = [0, 0], sizes = [8, 32], strides = [1, 1]} : vector<8x96xf32> to vector<8x32xf32>
    %147 = vector.extract_strided_slice %143 {offsets = [0, 32], sizes = [8, 32], strides = [1, 1]} : vector<8x96xf32> to vector<8x32xf32>
    %148 = vector.extract_strided_slice %143 {offsets = [0, 64], sizes = [8, 32], strides = [1, 1]} : vector<8x96xf32> to vector<8x32xf32>
    %149 = arith.mulf %147, %128 : vector<8x32xf32>
    %150 = arith.mulf %146, %145 : vector<8x32xf32>
    %151 = arith.addf %149, %150 : vector<8x32xf32>
    %152 = math.tanh %151 : vector<8x32xf32>
    %153 = arith.mulf %148, %152 : vector<8x32xf32>
    %c3_111 = arith.constant 3 : index
    %c0_112 = arith.constant 0 : index
    %c0_113 = arith.constant 0 : index
    %154 = vector.load %arg9[%c3_111, %c0_112, %c0_113] : memref<8x8x128xf32, #tpu.memory_space<vmem>>, vector<1x8x128xf32>
    %155 = vector.shape_cast %154 : vector<1x8x128xf32> to vector<8x128xf32>
    %c0_114 = arith.constant 0 : index
    %c0_115 = arith.constant 0 : index
    %156 = vector.load %arg5[%c0_114, %c0_115] : memref<32x128xf32, #tpu.memory_space<vmem>>, vector<32x128xf32>
    %cst_116 = arith.constant dense<0.000000e+00> : vector<8x128xf32>
    %157 = tpu.matmul %153, %156, %cst_116 {dimension_numbers = #tpu.dot_dimension_numbers<[1], [0], [0], [1], [0, 0, 1, 1], [], []>} : vector<8x32xf32>, vector<32x128xf32>, vector<8x128xf32> -> vector<8x128xf32>
    %158 = arith.addf %155, %157 : vector<8x128xf32>
    %159 = vector.extract_strided_slice %158 {offsets = [0, 0], sizes = [8, 96], strides = [1, 1]} : vector<8x128xf32> to vector<8x96xf32>
    %cst_117 = arith.constant 5.000000e-01 : f32
    %160 = vector.broadcast %cst_117 : f32 to vector<8x96xf32>
    %161 = arith.mulf %160, %159 : vector<8x96xf32>
    %162 = math.tanh %161 : vector<8x96xf32>
    %cst_118 = arith.constant 5.000000e-01 : f32
    %163 = vector.broadcast %cst_118 : f32 to vector<8x96xf32>
    %164 = arith.mulf %163, %162 : vector<8x96xf32>
    %cst_119 = arith.constant 5.000000e-01 : f32
    %165 = vector.broadcast %cst_119 : f32 to vector<8x96xf32>
    %166 = arith.addf %164, %165 : vector<8x96xf32>
    %167 = vector.extract_strided_slice %158 {offsets = [0, 96], sizes = [8, 32], strides = [1, 1]} : vector<8x128xf32> to vector<8x32xf32>
    %168 = math.tanh %167 : vector<8x32xf32>
    %169 = vector.extract_strided_slice %166 {offsets = [0, 0], sizes = [8, 32], strides = [1, 1]} : vector<8x96xf32> to vector<8x32xf32>
    %170 = vector.extract_strided_slice %166 {offsets = [0, 32], sizes = [8, 32], strides = [1, 1]} : vector<8x96xf32> to vector<8x32xf32>
    %171 = vector.extract_strided_slice %166 {offsets = [0, 64], sizes = [8, 32], strides = [1, 1]} : vector<8x96xf32> to vector<8x32xf32>
    %172 = arith.mulf %170, %151 : vector<8x32xf32>
    %173 = arith.mulf %169, %168 : vector<8x32xf32>
    %174 = arith.addf %172, %173 : vector<8x32xf32>
    %175 = math.tanh %174 : vector<8x32xf32>
    %176 = arith.mulf %171, %175 : vector<8x32xf32>
    %c4_120 = arith.constant 4 : index
    %c0_121 = arith.constant 0 : index
    %c0_122 = arith.constant 0 : index
    %177 = vector.load %arg9[%c4_120, %c0_121, %c0_122] : memref<8x8x128xf32, #tpu.memory_space<vmem>>, vector<1x8x128xf32>
    %178 = vector.shape_cast %177 : vector<1x8x128xf32> to vector<8x128xf32>
    %c0_123 = arith.constant 0 : index
    %c0_124 = arith.constant 0 : index
    %179 = vector.load %arg5[%c0_123, %c0_124] : memref<32x128xf32, #tpu.memory_space<vmem>>, vector<32x128xf32>
    %cst_125 = arith.constant dense<0.000000e+00> : vector<8x128xf32>
    %180 = tpu.matmul %176, %179, %cst_125 {dimension_numbers = #tpu.dot_dimension_numbers<[1], [0], [0], [1], [0, 0, 1, 1], [], []>} : vector<8x32xf32>, vector<32x128xf32>, vector<8x128xf32> -> vector<8x128xf32>
    %181 = arith.addf %178, %180 : vector<8x128xf32>
    %182 = vector.extract_strided_slice %181 {offsets = [0, 0], sizes = [8, 96], strides = [1, 1]} : vector<8x128xf32> to vector<8x96xf32>
    %cst_126 = arith.constant 5.000000e-01 : f32
    %183 = vector.broadcast %cst_126 : f32 to vector<8x96xf32>
    %184 = arith.mulf %183, %182 : vector<8x96xf32>
    %185 = math.tanh %184 : vector<8x96xf32>
    %cst_127 = arith.constant 5.000000e-01 : f32
    %186 = vector.broadcast %cst_127 : f32 to vector<8x96xf32>
    %187 = arith.mulf %186, %185 : vector<8x96xf32>
    %cst_128 = arith.constant 5.000000e-01 : f32
    %188 = vector.broadcast %cst_128 : f32 to vector<8x96xf32>
    %189 = arith.addf %187, %188 : vector<8x96xf32>
    %190 = vector.extract_strided_slice %181 {offsets = [0, 96], sizes = [8, 32], strides = [1, 1]} : vector<8x128xf32> to vector<8x32xf32>
    %191 = math.tanh %190 : vector<8x32xf32>
    %192 = vector.extract_strided_slice %189 {offsets = [0, 0], sizes = [8, 32], strides = [1, 1]} : vector<8x96xf32> to vector<8x32xf32>
    %193 = vector.extract_strided_slice %189 {offsets = [0, 32], sizes = [8, 32], strides = [1, 1]} : vector<8x96xf32> to vector<8x32xf32>
    %194 = vector.extract_strided_slice %189 {offsets = [0, 64], sizes = [8, 32], strides = [1, 1]} : vector<8x96xf32> to vector<8x32xf32>
    %195 = arith.mulf %193, %174 : vector<8x32xf32>
    %196 = arith.mulf %192, %191 : vector<8x32xf32>
    %197 = arith.addf %195, %196 : vector<8x32xf32>
    %198 = math.tanh %197 : vector<8x32xf32>
    %199 = arith.mulf %194, %198 : vector<8x32xf32>
    %c5_129 = arith.constant 5 : index
    %c0_130 = arith.constant 0 : index
    %c0_131 = arith.constant 0 : index
    %200 = vector.load %arg9[%c5_129, %c0_130, %c0_131] : memref<8x8x128xf32, #tpu.memory_space<vmem>>, vector<1x8x128xf32>
    %201 = vector.shape_cast %200 : vector<1x8x128xf32> to vector<8x128xf32>
    %c0_132 = arith.constant 0 : index
    %c0_133 = arith.constant 0 : index
    %202 = vector.load %arg5[%c0_132, %c0_133] : memref<32x128xf32, #tpu.memory_space<vmem>>, vector<32x128xf32>
    %cst_134 = arith.constant dense<0.000000e+00> : vector<8x128xf32>
    %203 = tpu.matmul %199, %202, %cst_134 {dimension_numbers = #tpu.dot_dimension_numbers<[1], [0], [0], [1], [0, 0, 1, 1], [], []>} : vector<8x32xf32>, vector<32x128xf32>, vector<8x128xf32> -> vector<8x128xf32>
    %204 = arith.addf %201, %203 : vector<8x128xf32>
    %205 = vector.extract_strided_slice %204 {offsets = [0, 0], sizes = [8, 96], strides = [1, 1]} : vector<8x128xf32> to vector<8x96xf32>
    %cst_135 = arith.constant 5.000000e-01 : f32
    %206 = vector.broadcast %cst_135 : f32 to vector<8x96xf32>
    %207 = arith.mulf %206, %205 : vector<8x96xf32>
    %208 = math.tanh %207 : vector<8x96xf32>
    %cst_136 = arith.constant 5.000000e-01 : f32
    %209 = vector.broadcast %cst_136 : f32 to vector<8x96xf32>
    %210 = arith.mulf %209, %208 : vector<8x96xf32>
    %cst_137 = arith.constant 5.000000e-01 : f32
    %211 = vector.broadcast %cst_137 : f32 to vector<8x96xf32>
    %212 = arith.addf %210, %211 : vector<8x96xf32>
    %213 = vector.extract_strided_slice %204 {offsets = [0, 96], sizes = [8, 32], strides = [1, 1]} : vector<8x128xf32> to vector<8x32xf32>
    %214 = math.tanh %213 : vector<8x32xf32>
    %215 = vector.extract_strided_slice %212 {offsets = [0, 0], sizes = [8, 32], strides = [1, 1]} : vector<8x96xf32> to vector<8x32xf32>
    %216 = vector.extract_strided_slice %212 {offsets = [0, 32], sizes = [8, 32], strides = [1, 1]} : vector<8x96xf32> to vector<8x32xf32>
    %217 = vector.extract_strided_slice %212 {offsets = [0, 64], sizes = [8, 32], strides = [1, 1]} : vector<8x96xf32> to vector<8x32xf32>
    %218 = arith.mulf %216, %197 : vector<8x32xf32>
    %219 = arith.mulf %215, %214 : vector<8x32xf32>
    %220 = arith.addf %218, %219 : vector<8x32xf32>
    %221 = math.tanh %220 : vector<8x32xf32>
    %222 = arith.mulf %217, %221 : vector<8x32xf32>
    %c6_138 = arith.constant 6 : index
    %c0_139 = arith.constant 0 : index
    %c0_140 = arith.constant 0 : index
    %223 = vector.load %arg9[%c6_138, %c0_139, %c0_140] : memref<8x8x128xf32, #tpu.memory_space<vmem>>, vector<1x8x128xf32>
    %224 = vector.shape_cast %223 : vector<1x8x128xf32> to vector<8x128xf32>
    %c0_141 = arith.constant 0 : index
    %c0_142 = arith.constant 0 : index
    %225 = vector.load %arg5[%c0_141, %c0_142] : memref<32x128xf32, #tpu.memory_space<vmem>>, vector<32x128xf32>
    %cst_143 = arith.constant dense<0.000000e+00> : vector<8x128xf32>
    %226 = tpu.matmul %222, %225, %cst_143 {dimension_numbers = #tpu.dot_dimension_numbers<[1], [0], [0], [1], [0, 0, 1, 1], [], []>} : vector<8x32xf32>, vector<32x128xf32>, vector<8x128xf32> -> vector<8x128xf32>
    %227 = arith.addf %224, %226 : vector<8x128xf32>
    %228 = vector.extract_strided_slice %227 {offsets = [0, 0], sizes = [8, 96], strides = [1, 1]} : vector<8x128xf32> to vector<8x96xf32>
    %cst_144 = arith.constant 5.000000e-01 : f32
    %229 = vector.broadcast %cst_144 : f32 to vector<8x96xf32>
    %230 = arith.mulf %229, %228 : vector<8x96xf32>
    %231 = math.tanh %230 : vector<8x96xf32>
    %cst_145 = arith.constant 5.000000e-01 : f32
    %232 = vector.broadcast %cst_145 : f32 to vector<8x96xf32>
    %233 = arith.mulf %232, %231 : vector<8x96xf32>
    %cst_146 = arith.constant 5.000000e-01 : f32
    %234 = vector.broadcast %cst_146 : f32 to vector<8x96xf32>
    %235 = arith.addf %233, %234 : vector<8x96xf32>
    %236 = vector.extract_strided_slice %227 {offsets = [0, 96], sizes = [8, 32], strides = [1, 1]} : vector<8x128xf32> to vector<8x32xf32>
    %237 = math.tanh %236 : vector<8x32xf32>
    %238 = vector.extract_strided_slice %235 {offsets = [0, 0], sizes = [8, 32], strides = [1, 1]} : vector<8x96xf32> to vector<8x32xf32>
    %239 = vector.extract_strided_slice %235 {offsets = [0, 32], sizes = [8, 32], strides = [1, 1]} : vector<8x96xf32> to vector<8x32xf32>
    %240 = vector.extract_strided_slice %235 {offsets = [0, 64], sizes = [8, 32], strides = [1, 1]} : vector<8x96xf32> to vector<8x32xf32>
    %241 = arith.mulf %239, %220 : vector<8x32xf32>
    %242 = arith.mulf %238, %237 : vector<8x32xf32>
    %243 = arith.addf %241, %242 : vector<8x32xf32>
    %244 = math.tanh %243 : vector<8x32xf32>
    %245 = arith.mulf %240, %244 : vector<8x32xf32>
    %c7_147 = arith.constant 7 : index
    %c0_148 = arith.constant 0 : index
    %c0_149 = arith.constant 0 : index
    %246 = vector.load %arg9[%c7_147, %c0_148, %c0_149] : memref<8x8x128xf32, #tpu.memory_space<vmem>>, vector<1x8x128xf32>
    %247 = vector.shape_cast %246 : vector<1x8x128xf32> to vector<8x128xf32>
    %c0_150 = arith.constant 0 : index
    %c0_151 = arith.constant 0 : index
    %248 = vector.load %arg5[%c0_150, %c0_151] : memref<32x128xf32, #tpu.memory_space<vmem>>, vector<32x128xf32>
    %cst_152 = arith.constant dense<0.000000e+00> : vector<8x128xf32>
    %249 = tpu.matmul %245, %248, %cst_152 {dimension_numbers = #tpu.dot_dimension_numbers<[1], [0], [0], [1], [0, 0, 1, 1], [], []>} : vector<8x32xf32>, vector<32x128xf32>, vector<8x128xf32> -> vector<8x128xf32>
    %250 = arith.addf %247, %249 : vector<8x128xf32>
    %251 = vector.extract_strided_slice %250 {offsets = [0, 0], sizes = [8, 96], strides = [1, 1]} : vector<8x128xf32> to vector<8x96xf32>
    %cst_153 = arith.constant 5.000000e-01 : f32
    %252 = vector.broadcast %cst_153 : f32 to vector<8x96xf32>
    %253 = arith.mulf %252, %251 : vector<8x96xf32>
    %254 = math.tanh %253 : vector<8x96xf32>
    %cst_154 = arith.constant 5.000000e-01 : f32
    %255 = vector.broadcast %cst_154 : f32 to vector<8x96xf32>
    %256 = arith.mulf %255, %254 : vector<8x96xf32>
    %cst_155 = arith.constant 5.000000e-01 : f32
    %257 = vector.broadcast %cst_155 : f32 to vector<8x96xf32>
    %258 = arith.addf %256, %257 : vector<8x96xf32>
    %259 = vector.extract_strided_slice %250 {offsets = [0, 96], sizes = [8, 32], strides = [1, 1]} : vector<8x128xf32> to vector<8x32xf32>
    %260 = math.tanh %259 : vector<8x32xf32>
    %261 = vector.extract_strided_slice %258 {offsets = [0, 0], sizes = [8, 32], strides = [1, 1]} : vector<8x96xf32> to vector<8x32xf32>
    %262 = vector.extract_strided_slice %258 {offsets = [0, 32], sizes = [8, 32], strides = [1, 1]} : vector<8x96xf32> to vector<8x32xf32>
    %263 = vector.extract_strided_slice %258 {offsets = [0, 64], sizes = [8, 32], strides = [1, 1]} : vector<8x96xf32> to vector<8x32xf32>
    %264 = arith.mulf %262, %243 : vector<8x32xf32>
    %265 = arith.mulf %261, %260 : vector<8x32xf32>
    %266 = arith.addf %264, %265 : vector<8x32xf32>
    %267 = math.tanh %266 : vector<8x32xf32>
    %268 = arith.mulf %263, %267 : vector<8x32xf32>
    %c0_156 = arith.constant 0 : index
    %c0_157 = arith.constant 0 : index
    %269 = vector.load %arg10[%c0_156, %c0_157] : memref<8x32xf32, #tpu.memory_space<vmem>>, vector<8x32xf32>
    tpu.vector_store %arg10[%c0_156, %c0_157], %268 {strides = array<i32>} : memref<8x32xf32, #tpu.memory_space<vmem>>, vector<8x32xf32>,
    %c0_158 = arith.constant 0 : index
    %c0_159 = arith.constant 0 : index
    %270 = vector.load %arg11[%c0_158, %c0_159] : memref<8x32xf32, #tpu.memory_space<vmem>>, vector<8x32xf32>
    tpu.vector_store %arg11[%c0_158, %c0_159], %266 {strides = array<i32>} : memref<8x32xf32, #tpu.memory_space<vmem>>, vector<8x32xf32>,
    %c0_i32_160 = arith.constant 0 : i32
    %271 = arith.cmpi eq, %arg1, %c0_i32_160 : i32
    %272 = arith.extui %271 : i1 to i32
    %c0_i32_161 = arith.constant 0 : i32
    %273 = arith.cmpi ne, %272, %c0_i32_161 : i32
    scf.if %273 {
      %c0_162 = arith.constant 0 : index
      %c0_163 = arith.constant 0 : index
      %274 = vector.load %arg10[%c0_162, %c0_163] : memref<8x32xf32, #tpu.memory_space<vmem>>, vector<8x32xf32>
      %c0_164 = arith.constant 0 : index
      %c0_165 = arith.constant 0 : index
      %275 = vector.load %arg6[%c0_164, %c0_165] : memref<1x32xf32, #tpu.memory_space<vmem>>, vector<1x32xf32>
      %276 = vector.broadcast %275 : vector<1x32xf32> to vector<8x32xf32>
      %277 = arith.mulf %274, %276 : vector<8x32xf32>
      %cst_166 = arith.constant dense<0.000000e+00> : vector<8xf32>
      %278 = vector.multi_reduction <add>, %277, %cst_166 [1] : vector<8x32xf32> to vector<8xf32>
      %279 = vector.shape_cast %278 : vector<8xf32> to vector<8x1xf32>
      %c0_167 = arith.constant 0 : index
      %c0_168 = arith.constant 0 : index
      %280 = vector.load %arg7[%c0_167, %c0_168] : memref<1x1xf32, #tpu.memory_space<vmem>>, vector<1x1xf32>
      %281 = vector.broadcast %280 : vector<1x1xf32> to vector<8x1xf32>
      %282 = arith.addf %279, %281 : vector<8x1xf32>
      %283 = arith.negf %282 : vector<8x1xf32>
      %284 = math.exp %283 : vector<8x1xf32>
      %cst_169 = arith.constant 1.000000e+00 : f32
      %285 = vector.broadcast %cst_169 : f32 to vector<8x1xf32>
      %286 = arith.addf %285, %284 : vector<8x1xf32>
      %287 = arith.divf %285, %286 : vector<8x1xf32>
      %c0_170 = arith.constant 0 : index
      %c0_171 = arith.constant 0 : index
      %288 = vector.load %arg8[%c0_170, %c0_171] : memref<8x1xf32, #tpu.memory_space<vmem>>, vector<8x1xf32>
      tpu.vector_store %arg8[%c0_170, %c0_171], %287 {strides = array<i32>} : memref<8x1xf32, #tpu.memory_space<vmem>>, vector<8x1xf32>,
    } else {
    }
    return
  }
  func.func @transform_0(%arg0: i32, %arg1: i32) -> (i32, i32, i32) {
    %c0_i32 = arith.constant 0 : i32
    %c0_i32_0 = arith.constant 0 : i32
    return %arg1, %arg0, %c0_i32 : i32, i32, i32
  }
  func.func @transform_1(%arg0: i32, %arg1: i32) -> (i32, i32) {
    %c0_i32 = arith.constant 0 : i32
    %c0_i32_0 = arith.constant 0 : i32
    %c0_i32_1 = arith.constant 0 : i32
    return %c0_i32, %c0_i32_0 : i32, i32
  }
  func.func @transform_2(%arg0: i32, %arg1: i32) -> (i32, i32) {
    %c0_i32 = arith.constant 0 : i32
    %c0_i32_0 = arith.constant 0 : i32
    %c0_i32_1 = arith.constant 0 : i32
    return %c0_i32, %c0_i32_0 : i32, i32
  }
  func.func @transform_3(%arg0: i32, %arg1: i32) -> (i32, i32) {
    %c0_i32 = arith.constant 0 : i32
    %c0_i32_0 = arith.constant 0 : i32
    %c0_i32_1 = arith.constant 0 : i32
    return %c0_i32, %c0_i32_0 : i32, i32
  }
  func.func @transform_4(%arg0: i32, %arg1: i32) -> (i32, i32) {
    %c0_i32 = arith.constant 0 : i32
    %c0_i32_0 = arith.constant 0 : i32
    %c0_i32_1 = arith.constant 0 : i32
    return %c0_i32, %c0_i32_0 : i32, i32
  }
  func.func @transform_5(%arg0: i32, %arg1: i32) -> (i32, i32) {
    %c0_i32 = arith.constant 0 : i32
    %c0_i32_0 = arith.constant 0 : i32
    %c0_i32_1 = arith.constant 0 : i32
    return %c0_i32, %c0_i32_0 : i32, i32
  }
  func.func @transform_6(%arg0: i32, %arg1: i32) -> (i32, i32) {
    %c0_i32 = arith.constant 0 : i32
    %c0_i32_0 = arith.constant 0 : i32
    return %arg0, %c0_i32 : i32, i32
  }
}

</mosaic_0001>

<bundles_post_ra>
// kernel: tpu_custom_call.1
= control target key start
LH: loop header
LB: loop body
LE: loop exit
PB: predicated region body
PF: predicated region fallthrough
CT: control target
= control target key end

     0   :  { %vm45_vm0 = vcmask 1043456   ;;  %vm41_vm1 = vcmask 31744   ;;  %v1938_v0 = vmov 0.0   ;;  %vm1939_vm2 = vmmov 0   ;;  %s1941_s22 = smov 32   ;;  %s1943_s15 = smov 96   ;;  %s2201_s1 = inlined_call_operand.vmem [shape: f32[4,128], index: 1, kind: input, shape index: {}]   ;;  %s2202_s0 = inlined_call_operand.vmem [shape: f32[8,8,4], index: 0, kind: input, shape index: {}]   ;;  %s2203_s3 = inlined_call_operand.vmem [shape: f32[32,128], index: 3, kind: input, shape index: {}]   ;;  %s2204_s2 = inlined_call_operand.vmem [shape: f32[1,128], index: 2, kind: input, shape index: {}]   ;;  %s2205_s5 = inlined_call_operand.<no memory space> [shape: f32[1,1], index: 5, kind: input, shape index: {}]   ;;  %s2206_s4 = inlined_call_operand.vmem [shape: f32[1,32], index: 4, kind: input, shape index: {}]   ;;  %s2207_s6 = inlined_call_operand.vmem [shape: f32[8,1], index: 6, kind: output, shape index: {}]  }
   0x1   :  { %1680 = vmatprep.subr.mxu0 %v1938_v0  ;;  %v33_v1 = vld [vmem:[%s2201_s1] sm:$0xf]  ;;  %1682 = vmatprep.mubr.msk.f32.mxu0 %vm1939_vm2, %v1938_v0  ;;  %vm29_vm3 = vcmask 261120   ;;  %v1589_v4 = vld [vmem:[%s2202_s0 + $0x10] sm:$0xff]  ;;  %v740_v9 = vld [vmem:[%s2203_s3 + $0x8] sm:$0xff]  ;;  %v1940_v12 = vmov 0.0|0.0  }
   0x2   :  { %v32_v2 = vld [vmem:[%s2202_s0] sm:$0xff]  ;;  %1681 = vmatpush3.msk.msra.mxu0 %vm45_vm0, %v33_v1  ;;  %1685 = vmatprep.subr.mxu1 %v1938_v0  ;;  %30 = vst.msk [vmem:[#allocation3] sm:$0xff] %vm29_vm3, %v1938_v0  ;;  %31 = vst.msk [vmem:[#allocation4] sm:$0xff] %vm29_vm3, %v1938_v0  ;;  %v1605_v10 = vld [vmem:[%s2202_s0 + $0x30] sm:$0xff]  ;;  %vm1576_vm4 = vcmask 7168  }
   0x3   :  { %v210_v3 = vld [vmem:[%s2201_s1] sm:$0xf]  ;;  %1683 = vmatmul.mubr.msk.f32.vlgmr.msra.gmra.mrb[0].mxu0 %vm41_vm1, %v32_v2  ;;  %1690 = vmatprep.subr.mxu0 %v1938_v0  ;;  %v741_v13 = vld [vmem:[%s2203_s3 + $0x10] sm:$0xff]  ;;  %v742_v14 = vld [vmem:[%s2203_s3 + $0x18] sm:$0xff] }
   0x4   :  { %1691 = vmatpush3.msk.msra.mxu0 %vm45_vm0, %v210_v3  ;;  %1692 = vmatprep.mubr.msk.f32.mxu0 %vm1939_vm2, %v1938_v0  ;;  %v386_v5 = vld [vmem:[%s2201_s1] sm:$0xf]  ;;  %v2046_v15 = vpack.c.bf16 %v742_v14, %v741_v13  ;;  %v1585_v34 = vld [vmem:[%s2202_s0 + $0x8] sm:$0xff]  ;;  %v1593_v36 = vld [vmem:[%s2202_s0 + $0x18] sm:$0xff] }
   0x5   :  { %1700 = vmatprep.subr.mxu0 %v1938_v0  ;;  %1687 = vmatprep.mubr.msk.f32.mxu1 %vm1939_vm2, %v1938_v0  ;;  %v1597_v6 = vld [vmem:[%s2202_s0 + $0x20] sm:$0xff]  ;;  %v1601_v38 = vld [vmem:[%s2202_s0 + $0x28] sm:$0xff]  ;;  %v1609_v41 = vld [vmem:[%s2202_s0 + $0x38] sm:$0xff]  ;;  %s1942_s0 = smov 64  }
   0x6   :  { %v562_v7 = vld [vmem:[%s2201_s1] sm:$0xf] }
   0x7   :  { %1693 = vmatmul.mubr.msk.f32.vlgmr.msra.gmra.mrb[2].mxu0 %vm41_vm1, %v1589_v4  ;;  %v739_v8 = vld [vmem:[%s2203_s3] sm:$0xff] }
   0x8   :  { %1701 = vmatpush3.msk.msra.mxu0 %vm45_vm0, %v386_v5  ;;  %1702 = vmatprep.mubr.msk.f32.mxu0 %vm1939_vm2, %v1938_v0  ;;  %v2035_v11 = vpack.c.bf16 %v740_v9, %v739_v8  ;;  %v2063_v17 = vld [vmem:[%s2204_s2] ss:$0 sm:$0xff] }
   0x9   :  { %1710 = vmatprep.subr.mxu0 %v1938_v0  ;;  %v736_v16 = vld [vmem:[#allocation3] sm:$0xff]  ;;  %v737_v22 = vld [vmem:[#allocation4] sm:$0xff] }
   0xa   :  { %v122_v33 = vld [vmem:[%s2201_s1] sm:$0xf] }
   0xb   :  { %1703 = vmatmul.mubr.msk.f32.vlgmr.msra.gmra.mrb[4].mxu0 %vm41_vm1, %v1597_v6  ;;  %v298_v35 = vld [vmem:[%s2201_s1] sm:$0xf]  ;;  %1686 = vmatpush3.msk.msra.mxu1 %vm45_vm0, %v122_v33 }
   0xc   :  { %1711 = vmatpush3.msk.msra.mxu0 %vm45_vm0, %v562_v7  ;;  %1712 = vmatprep.mubr.msk.f32.mxu0 %vm1939_vm2, %v1938_v0  ;;  %v474_v37 = vld [vmem:[%s2201_s1] sm:$0xf] }
   0xd   :  { %1808 = vmatprep.subr.bf16.mxu0 %v1940_v12  ;;  %1688 = vmatmul.mubr.msk.f32.vlgmr.msra.gmra.mrb[0].mxu1 %vm41_vm1, %v1585_v34  ;;  %v650_v39 = vld [vmem:[%s2201_s1] sm:$0xf] }
   0xe   :  { %1695 = vmatprep.subr.mxu1 %v1938_v0  ;;  %1697 = vmatprep.mubr.msk.f32.mxu1 %vm1939_vm2, %v1938_v0 }
   0xf   :  { %1713 = vmatmul.mubr.msk.f32.vlgmr.msra.gmra.mrb[6].mxu0 %vm41_vm1, %v1605_v10  ;;  %1696 = vmatpush3.msk.msra.mxu1 %vm45_vm0, %v298_v35 }
  0x10   :  { %1810 = vmatpush3.bf16.msra.mxu0 %v2035_v11  ;;  %1728 = vmatprep.mubr.msk.f32.mxu0 %vm1939_vm2, %v1938_v0 }
  0x11   :  { %1811 = vmatprep.subr.bf16.mxu0 %v1940_v12  ;;  %1705 = vmatprep.subr.mxu1 %v1938_v0 }
  0x12   :  { %1698 = vmatmul.mubr.msk.f32.vlgmr.msra.gmra.mrb[2].mxu1 %vm41_vm1, %v1593_v36 }
  0x13   :  { %1706 = vmatpush3.msk.msra.mxu1 %vm45_vm0, %v474_v37  ;;  %1707 = vmatprep.mubr.msk.f32.mxu1 %vm1939_vm2, %v1938_v0 }
  0x14   :  { %1813 = vmatpush3.bf16.msra.mxu0 %v2046_v15  ;;  %1715 = vmatprep.subr.mxu1 %v1938_v0 }
  0x15   :  { %1820 = vmatprep.subr.bf16.mxu0 %v1940_v12 }
  0x16   :  { %1708 = vmatmul.mubr.msk.f32.vlgmr.msra.gmra.mrb[4].mxu1 %vm41_vm1, %v1601_v38 }
  0x17   :  { %1729 = vmatmul.mubr.msk.f32.vlgmr.msra.gmra.mrb[0].mxu0 %vm29_vm3, %v736_v16  ;;  %1716 = vmatpush3.msk.msra.mxu1 %vm45_vm0, %v650_v39 }
  0x18   :  { %1822 = vmatpush3.bf16.msra.mxu0 %v2035_v11  ;;  %1750 = vmatprep.mubr.msk.f32.mxu0 %vm1939_vm2, %v1938_v0 }
  0x19   :  { %1823 = vmatprep.subr.bf16.mxu0 %v1940_v12  ;;  %1717 = vmatprep.mubr.msk.f32.mxu1 %vm1939_vm2, %v1938_v0 }
  0x1a   :  { %1814 = vmatprep.subr.bf16.mxu1 %v1940_v12  ;;  %1718 = vmatmul.mubr.msk.f32.vlgmr.msra.gmra.mrb[6].mxu1 %vm41_vm1, %v1609_v41 }
  0x1b   :  { %1816 = vmatpush3.bf16.msra.mxu1 %v2035_v11  ;;  %1739 = vmatprep.mubr.msk.f32.mxu1 %vm1939_vm2, %v1938_v0 }
  0x1c   :  { %1825 = vmatpush3.bf16.msra.mxu0 %v2046_v15  ;;  %1817 = vmatprep.subr.bf16.mxu1 %v1940_v12 }
  0x1d   :  { %1832 = vmatprep.subr.bf16.mxu0 %v1940_v12 }
  0x1f   :  { %1819 = vmatpush3.bf16.msra.mxu1 %v2046_v15 }
  0x20   :  { %1826 = vmatprep.subr.bf16.mxu1 %v1940_v12 }
  0xea   :  { %v813_v18 = vpop.f32.mrb[0].mxu0 }
  0xeb   :  { %v1856_v19 = vadd.f32 %v2063_v17, %v813_v18  ;;  %v1730_v20 = vpop.f32.mrb[1].mxu0 }
  0xed   :  { %1886 = vtanh.f32 %v1856_v19  ;;  %v818_v23 = vmul.f32 0.5, %v1856_v19 }
  0xef   :  { %1888 = vtanh.f32 %v818_v23 }
  0xf7   :  { %v1887_v21 = vpop.eup %1886 }
  0xf8   :  { %829 = vrot.lane.b32.xlu0 %v1887_v21, %s1941_s22 }
  0xf9   :  { %v1889_v24 = vpop.eup %1888 }
  0xfa   :  { %v820_v25 = vmul.f32 0.5, %v1889_v24 }
  0xfc   :  { %824 = vrot.lane.b32.xlu0 %v737_v22, %s1941_s22  ;;  %v821_v26 = vadd.f32 0.5, %v820_v25 }
 0x16a   :  { %v830_v27 = vpop.permute.xlu0 %829 }
 0x16b   :  { %v832_v28 = vmul.f32 %v830_v27, %v821_v26 }
 0x16d   :  { %834 = vrot.lane.b32.xlu1 %v832_v28, %s1941_s22 }
 0x16e   :  { %v825_v29 = vpop.permute.xlu0 %824 }
 0x16f   :  { %v827_v30 = vmul.f32 %v825_v29, %v821_v26 }
 0x1df   :  { %v835_v31 = vpop.permute.xlu1 %834 }
 0x1e0   :  { %v837_v32 = vadd.f32 %v835_v31, %v827_v30 }
 0x1e2   :  { %1890 = vtanh.f32 %v837_v32 }
 0x1ec   :  { %v1891_v40 = vpop.eup %1890 }
 0x1ed   :  { %840 = vrot.lane.b32.xlu1 %v1891_v40, %s1941_s22 }
 0x25f   :  { %v841_v42 = vpop.permute.xlu1 %840 }
 0x260   :  { %v843_v43 = vmul.f32 %v841_v42, %v821_v26 }
 0x262   :  { %846 = vrot.lane.b32.xlu0 %v843_v43, %s1942_s0 }
 0x2d4   :  { %v847_v44 = vpop.permute.xlu0 %846 }
 0x2d5   :  { %1740 = vmatmul.mubr.msk.f32.vlgmr.msra.gmra.mrb[0].mxu1 %vm29_vm3, %v847_v44 }
 0x2d6   :  { %1828 = vmatpush3.bf16.msra.mxu1 %v2035_v11  ;;  %1761 = vmatprep.mubr.msk.f32.mxu1 %vm1939_vm2, %v1938_v0 }
 0x2d7   :  { %1829 = vmatprep.subr.bf16.mxu1 %v1940_v12 }
 0x2da   :  { %1831 = vmatpush3.bf16.msra.mxu1 %v2046_v15 }
 0x2db   :  { %1838 = vmatprep.subr.bf16.mxu1 %v1940_v12 }
 0x3a8   :  { %v916_v45 = vpop.f32.mrb[0].mxu1 }
 0x3a9   :  { %v1857_v46 = vadd.f32 %v2063_v17, %v916_v45  ;;  %v1741_v47 = vpop.f32.mrb[1].mxu1 }
 0x3ab   :  { %1892 = vtanh.f32 %v1857_v46  ;;  %v921_v49 = vmul.f32 0.5, %v1857_v46 }
 0x3ad   :  { %1894 = vtanh.f32 %v921_v49 }
 0x3b5   :  { %v1893_v48 = vpop.eup %1892 }
 0x3b6   :  { %928 = vrot.lane.b32.xlu1 %v1893_v48, %s1941_s22 }
 0x3b7   :  { %v1895_v50 = vpop.eup %1894 }
 0x3b8   :  { %v923_v51 = vmul.f32 0.5, %v1895_v50 }
 0x3ba   :  { %v924_v52 = vadd.f32 0.5, %v923_v51 }
 0x3bc   :  { %v926_v55 = vmul.f32 %v924_v52, %v837_v32 }
 0x428   :  { %v929_v53 = vpop.permute.xlu1 %928 }
 0x429   :  { %v931_v54 = vmul.f32 %v929_v53, %v924_v52 }
 0x42b   :  { %933 = vrot.lane.b32.xlu0 %v931_v54, %s1941_s22 }
 0x49d   :  { %v934_v56 = vpop.permute.xlu0 %933 }
 0x49e   :  { %v936_v57 = vadd.f32 %v934_v56, %v926_v55 }
 0x4a0   :  { %1896 = vtanh.f32 %v936_v57 }
 0x4aa   :  { %v1897_v58 = vpop.eup %1896 }
 0x4ab   :  { %939 = vrot.lane.b32.xlu1 %v1897_v58, %s1941_s22 }
 0x51d   :  { %v940_v59 = vpop.permute.xlu1 %939 }
 0x51e   :  { %v942_v60 = vmul.f32 %v940_v59, %v924_v52 }
 0x520   :  { %945 = vrot.lane.b32.xlu0 %v942_v60, %s1942_s0 }
 0x592   :  { %v946_v61 = vpop.permute.xlu0 %945 }
 0x593   :  { %1751 = vmatmul.mubr.msk.f32.vlgmr.msra.gmra.mrb[2].mxu0 %vm29_vm3, %v946_v61 }
 0x594   :  { %1834 = vmatpush3.bf16.msra.mxu0 %v2035_v11  ;;  %1772 = vmatprep.mubr.msk.f32.mxu0 %vm1939_vm2, %v1938_v0 }
 0x595   :  { %1835 = vmatprep.subr.bf16.mxu0 %v1940_v12 }
 0x598   :  { %1837 = vmatpush3.bf16.msra.mxu0 %v2046_v15 }
 0x599   :  { %1844 = vmatprep.subr.bf16.mxu0 %v1940_v12 }
 0x666   :  { %v1015_v62 = vpop.f32.mrb[2].mxu0 }
 0x667   :  { %v1858_v63 = vadd.f32 %v2063_v17, %v1015_v62  ;;  %v1752_v1 = vpop.f32.mrb[3].mxu0 }
 0x669   :  { %1898 = vtanh.f32 %v1858_v63  ;;  %v1020_v3 = vmul.f32 0.5, %v1858_v63 }
 0x66b   :  { %1900 = vtanh.f32 %v1020_v3 }
 0x673   :  { %v1899_v2 = vpop.eup %1898 }
 0x674   :  { %1027 = vrot.lane.b32.xlu1 %v1899_v2, %s1941_s22 }
 0x675   :  { %v1901_v4 = vpop.eup %1900 }
 0x676   :  { %v1022_v5 = vmul.f32 0.5, %v1901_v4 }
 0x678   :  { %v1023_v6 = vadd.f32 0.5, %v1022_v5 }
 0x67a   :  { %v1025_v9 = vmul.f32 %v1023_v6, %v936_v57 }
 0x6e6   :  { %v1028_v7 = vpop.permute.xlu1 %1027 }
 0x6e7   :  { %v1030_v8 = vmul.f32 %v1028_v7, %v1023_v6 }
 0x6e9   :  { %1032 = vrot.lane.b32.xlu0 %v1030_v8, %s1941_s22 }
 0x75b   :  { %v1033_v10 = vpop.permute.xlu0 %1032 }
 0x75c   :  { %v1035_v13 = vadd.f32 %v1033_v10, %v1025_v9 }
 0x75e   :  { %1902 = vtanh.f32 %v1035_v13 }
 0x768   :  { %v1903_v14 = vpop.eup %1902 }
 0x769   :  { %1038 = vrot.lane.b32.xlu1 %v1903_v14, %s1941_s22 }
 0x7db   :  { %v1039_v16 = vpop.permute.xlu1 %1038 }
 0x7dc   :  { %v1041_v18 = vmul.f32 %v1039_v16, %v1023_v6 }
 0x7de   :  { %1044 = vrot.lane.b32.xlu0 %v1041_v18, %s1942_s0 }
 0x850   :  { %v1045_v19 = vpop.permute.xlu0 %1044 }
 0x851   :  { %1762 = vmatmul.mubr.msk.f32.vlgmr.msra.gmra.mrb[2].mxu1 %vm29_vm3, %v1045_v19 }
 0x852   :  { %1840 = vmatpush3.bf16.msra.mxu1 %v2035_v11  ;;  %1783 = vmatprep.mubr.msk.f32.mxu1 %vm1939_vm2, %v1938_v0 }
 0x853   :  { %1841 = vmatprep.subr.bf16.mxu1 %v1940_v12 }
 0x856   :  { %1843 = vmatpush3.bf16.msra.mxu1 %v2046_v15 }
 0x857   :  { %1850 = vmatprep.subr.bf16.mxu1 %v1940_v12 }
 0x924   :  { %v1114_v20 = vpop.f32.mrb[2].mxu1 }
 0x925   :  { %v1859_v21 = vadd.f32 %v2063_v17, %v1114_v20  ;;  %v1763_v22 = vpop.f32.mrb[3].mxu1 }
 0x927   :  { %1904 = vtanh.f32 %v1859_v21  ;;  %v1119_v24 = vmul.f32 0.5, %v1859_v21 }
 0x929   :  { %1906 = vtanh.f32 %v1119_v24 }
 0x931   :  { %v1905_v23 = vpop.eup %1904 }
 0x932   :  { %1126 = vrot.lane.b32.xlu1 %v1905_v23, %s1941_s22 }
 0x933   :  { %v1907_v25 = vpop.eup %1906 }
 0x934   :  { %v1121_v26 = vmul.f32 0.5, %v1907_v25 }
 0x936   :  { %v1122_v27 = vadd.f32 0.5, %v1121_v26 }
 0x938   :  { %v1124_v30 = vmul.f32 %v1122_v27, %v1035_v13 }
 0x9a4   :  { %v1127_v28 = vpop.permute.xlu1 %1126 }
 0x9a5   :  { %v1129_v29 = vmul.f32 %v1127_v28, %v1122_v27 }
 0x9a7   :  { %1131 = vrot.lane.b32.xlu0 %v1129_v29, %s1941_s22 }
 0xa19   :  { %v1132_v31 = vpop.permute.xlu0 %1131 }
 0xa1a   :  { %v1134_v32 = vadd.f32 %v1132_v31, %v1124_v30 }
 0xa1c   :  { %1908 = vtanh.f32 %v1134_v32 }
 0xa26   :  { %v1909_v33 = vpop.eup %1908 }
 0xa27   :  { %1137 = vrot.lane.b32.xlu1 %v1909_v33, %s1941_s22 }
 0xa99   :  { %v1138_v34 = vpop.permute.xlu1 %1137 }
 0xa9a   :  { %v1140_v35 = vmul.f32 %v1138_v34, %v1122_v27 }
 0xa9c   :  { %1143 = vrot.lane.b32.xlu0 %v1140_v35, %s1942_s0 }
 0xb0e   :  { %v1144_v36 = vpop.permute.xlu0 %1143 }
 0xb0f   :  { %1773 = vmatmul.mubr.msk.f32.vlgmr.msra.gmra.mrb[4].mxu0 %vm29_vm3, %v1144_v36 }
 0xb10   :  { %1846 = vmatpush3.bf16.msra.mxu0 %v2035_v11  ;;  %1794 = vmatprep.mubr.msk.f32.mxu0 %vm1939_vm2, %v1938_v0 }
 0xb11   :  { %1847 = vmatprep.subr.bf16.mxu0 %v1940_v12 }
 0xb14   :  { %1849 = vmatpush3.bf16.msra.mxu0 %v2046_v15 }
 0xbe2   :  { %v1213_v37 = vpop.f32.mrb[4].mxu0 }
 0xbe3   :  { %v1860_v38 = vadd.f32 %v2063_v17, %v1213_v37  ;;  %v1774_v39 = vpop.f32.mrb[5].mxu0 }
 0xbe5   :  { %1910 = vtanh.f32 %v1860_v38  ;;  %v1218_v41 = vmul.f32 0.5, %v1860_v38 }
 0xbe7   :  { %1912 = vtanh.f32 %v1218_v41 }
 0xbef   :  { %v1911_v40 = vpop.eup %1910 }
 0xbf0   :  { %1225 = vrot.lane.b32.xlu1 %v1911_v40, %s1941_s22  ;;  %v11_v40 = vstv %s2205_s5 }
 0xbf1   :  { %v1913_v42 = vpop.eup %1912  ;;  %12 = vst [vmem:[#allocation5] sm:$0x1] %v11_v40 }
 0xbf2   :  { %v1220_v43 = vmul.f32 0.5, %v1913_v42 }
 0xbf4   :  { %v1221_v44 = vadd.f32 0.5, %v1220_v43  ;;  %v1621_v43 = vld [vmem:[%s2206_s4] ss:$0 sm:$0xff] }
 0xbf6   :  { %v1223_v47 = vmul.f32 %v1221_v44, %v1134_v32 }
 0xc62   :  { %v1226_v45 = vpop.permute.xlu1 %1225 }
 0xc63   :  { %v1228_v46 = vmul.f32 %v1226_v45, %v1221_v44 }
 0xc65   :  { %1230 = vrot.lane.b32.xlu0 %v1228_v46, %s1941_s22 }
 0xcd7   :  { %v1231_v48 = vpop.permute.xlu0 %1230 }
 0xcd8   :  { %v1233_v49 = vadd.f32 %v1231_v48, %v1223_v47  ;;  %v1622_v47 = vld [vmem:[#allocation5] ss:$0 sm:$0xff] }
 0xcda   :  { %1914 = vtanh.f32 %v1233_v49 }
 0xce4   :  { %v1915_v50 = vpop.eup %1914 }
 0xce5   :  { %1236 = vrot.lane.b32.xlu1 %v1915_v50, %s1941_s22 }
 0xd57   :  { %v1237_v51 = vpop.permute.xlu1 %1236 }
 0xd58   :  { %v1239_v52 = vmul.f32 %v1237_v51, %v1221_v44 }
 0xd5a   :  { %1242 = vrot.lane.b32.xlu0 %v1239_v52, %s1942_s0 }
 0xdcc   :  { %v1243_v53 = vpop.permute.xlu0 %1242 }
 0xdcd   :  { %1784 = vmatmul.mubr.msk.f32.vlgmr.msra.gmra.mrb[4].mxu1 %vm29_vm3, %v1243_v53 }
 0xdce   :  { %1852 = vmatpush3.bf16.msra.mxu1 %v2035_v11  ;;  %1805 = vmatprep.mubr.msk.f32.mxu1 %vm1939_vm2, %v1938_v0 }
 0xdcf   :  { %1853 = vmatprep.subr.bf16.mxu1 %v1940_v12 }
 0xdd2   :  { %1855 = vmatpush3.bf16.msra.mxu1 %v2046_v15 }
 0xea0   :  { %v1312_v54 = vpop.f32.mrb[4].mxu1 }
 0xea1   :  { %v1861_v55 = vadd.f32 %v2063_v17, %v1312_v54  ;;  %v1785_v56 = vpop.f32.mrb[5].mxu1 }
 0xea3   :  { %1916 = vtanh.f32 %v1861_v55  ;;  %v1317_v58 = vmul.f32 0.5, %v1861_v55 }
 0xea5   :  { %1918 = vtanh.f32 %v1317_v58 }
 0xead   :  { %v1917_v57 = vpop.eup %1916 }
 0xeae   :  { %1324 = vrot.lane.b32.xlu1 %v1917_v57, %s1941_s22 }
 0xeaf   :  { %v1919_v59 = vpop.eup %1918 }
 0xeb0   :  { %v1319_v60 = vmul.f32 0.5, %v1919_v59 }
 0xeb2   :  { %v1320_v11 = vadd.f32 0.5, %v1319_v60 }
 0xeb4   :  { %v1322_v0 = vmul.f32 %v1320_v11, %v1233_v49 }
 0xf20   :  { %v1325_v61 = vpop.permute.xlu1 %1324 }
 0xf21   :  { %v1327_v62 = vmul.f32 %v1325_v61, %v1320_v11 }
 0xf23   :  { %1329 = vrot.lane.b32.xlu0 %v1327_v62, %s1941_s22 }
 0xf95   :  { %v1330_v12 = vpop.permute.xlu0 %1329 }
 0xf96   :  { %v1332_v15 = vadd.f32 %v1330_v12, %v1322_v0 }
 0xf98   :  { %1920 = vtanh.f32 %v1332_v15 }
 0xfa2   :  { %v1921_v63 = vpop.eup %1920 }
 0xfa3   :  { %1335 = vrot.lane.b32.xlu1 %v1921_v63, %s1941_s22 }
0x1015   :  { %v1336_v1 = vpop.permute.xlu1 %1335 }
0x1016   :  { %v1338_v2 = vmul.f32 %v1336_v1, %v1320_v11 }
0x1018   :  { %1341 = vrot.lane.b32.xlu0 %v1338_v2, %s1942_s0 }
0x108a   :  { %v1342_v3 = vpop.permute.xlu0 %1341 }
0x108b   :  { %1795 = vmatmul.mubr.msk.f32.vlgmr.msra.gmra.mrb[6].mxu0 %vm29_vm3, %v1342_v3 }
0x115e   :  { %v1411_v4 = vpop.f32.mrb[6].mxu0 }
0x115f   :  { %v1862_v5 = vadd.f32 %v2063_v17, %v1411_v4  ;;  %v1796_v6 = vpop.f32.mrb[7].mxu0 }
0x1161   :  { %1922 = vtanh.f32 %v1862_v5  ;;  %v1416_v8 = vmul.f32 0.5, %v1862_v5 }
0x1163   :  { %1924 = vtanh.f32 %v1416_v8 }
0x116b   :  { %v1923_v7 = vpop.eup %1922 }
0x116c   :  { %1423 = vrot.lane.b32.xlu1 %v1923_v7, %s1941_s22 }
0x116d   :  { %v1925_v9 = vpop.eup %1924 }
0x116e   :  { %v1418_v10 = vmul.f32 0.5, %v1925_v9 }
0x1170   :  { %v1419_v13 = vadd.f32 0.5, %v1418_v10 }
0x1172   :  { %v1421_v18 = vmul.f32 %v1419_v13, %v1332_v15 }
0x11de   :  { %v1424_v14 = vpop.permute.xlu1 %1423 }
0x11df   :  { %v1426_v16 = vmul.f32 %v1424_v14, %v1419_v13 }
0x11e1   :  { %1428 = vrot.lane.b32.xlu0 %v1426_v16, %s1941_s22 }
0x1253   :  { %v1429_v19 = vpop.permute.xlu0 %1428 }
0x1254   :  { %v1431_v20 = vadd.f32 %v1429_v19, %v1421_v18 }
0x1256   :  { %1926 = vtanh.f32 %v1431_v20 }
0x1260   :  { %v1927_v21 = vpop.eup %1926 }
0x1261   :  { %1434 = vrot.lane.b32.xlu1 %v1927_v21, %s1941_s22 }
0x12d3   :  { %v1435_v22 = vpop.permute.xlu1 %1434 }
0x12d4   :  { %v1437_v23 = vmul.f32 %v1435_v22, %v1419_v13 }
0x12d6   :  { %1440 = vrot.lane.b32.xlu0 %v1437_v23, %s1942_s0 }
0x1348   :  { %v1441_v24 = vpop.permute.xlu0 %1440 }
0x1349   :  { %1806 = vmatmul.mubr.msk.f32.vlgmr.msra.gmra.mrb[6].mxu1 %vm29_vm3, %v1441_v24 }
0x141c   :  { %v1510_v25 = vpop.f32.mrb[6].mxu1 }
0x141d   :  { %v1863_v26 = vadd.f32 %v2063_v17, %v1510_v25  ;;  %v1807_v27 = vpop.f32.mrb[7].mxu1 }
0x141f   :  { %1928 = vtanh.f32 %v1863_v26  ;;  %v1515_v29 = vmul.f32 0.5, %v1863_v26 }
0x1421   :  { %1930 = vtanh.f32 %v1515_v29 }
0x1429   :  { %v1929_v28 = vpop.eup %1928 }
0x142a   :  { %1522 = vrot.lane.b32.xlu1 %v1929_v28, %s1941_s22 }
0x142b   :  { %v1931_v30 = vpop.eup %1930 }
0x142c   :  { %v1517_v31 = vmul.f32 0.5, %v1931_v30 }
0x142e   :  { %v1518_v32 = vadd.f32 0.5, %v1517_v31 }
0x1430   :  { %v1520_v35 = vmul.f32 %v1518_v32, %v1431_v20 }
0x149c   :  { %v1523_v33 = vpop.permute.xlu1 %1522 }
0x149d   :  { %v1525_v34 = vmul.f32 %v1523_v33, %v1518_v32 }
0x149f   :  { %1527 = vrot.lane.b32.xlu0 %v1525_v34, %s1941_s22 }
0x1511   :  { %v1528_v36 = vpop.permute.xlu0 %1527 }
0x1512   :  { %v1530_v37 = vadd.f32 %v1528_v36, %v1520_v35 }
0x1514   :  { %1932 = vtanh.f32 %v1530_v37 }
0x151e   :  { %v1933_v38 = vpop.eup %1932 }
0x151f   :  { %1533 = vrot.lane.b32.xlu1 %v1933_v38, %s1941_s22 }
0x1591   :  { %v1534_v17 = vpop.permute.xlu1 %1533 }
0x1592   :  { %v1536_v39 = vmul.f32 %v1534_v17, %v1518_v32 }
0x1594   :  { %1538 = vrot.lane.b32.xlu0 %v1536_v39, %s1942_s0 }
0x1598   :  { %1543 = vrot.lane.b32.xlu0 %v1530_v37, %s1943_s15 }
0x1606   :  { %v1539_v41 = vpop.permute.xlu0 %1538 }
0x1607   :  { %1541 = vst.msk [vmem:[#allocation3] sm:$0xff] %vm29_vm3, %v1539_v41 }
0x160a   :  { %v1544_v42 = vpop.permute.xlu0 %1543 }
0x160b   :  { %1546 = vst.msk [vmem:[#allocation4] sm:$0xff] %vm29_vm3, %v1544_v42 }
0x160e   :  { %v1550_v44 = vld [vmem:[#allocation3] sm:$0xff] }
0x160f   :  { %v1558_v45 = vmul.f32 %v1621_v43, %v1550_v44 }
0x1611   :  { %v1559_v46 = vsel %vm29_vm3, %v1558_v45, 0.0 }
0x1612   :  { %1560 = vadd.xlane.f32.xlu1 %v1559_v46 }
0x169f   :  { %v1561_v48 = vpop.xlane.xlu1 %1560 }
0x16a0   :  { %v1569_v49 = vadd.f32 %v1622_v47, %v1561_v48 }
0x16a2   :  { %v1623_v50 = vmul.f32 -1.442695, %v1569_v49 }
0x16a4   :  { %1934 = vpow2.f32 %v1623_v50 }
0x16ae   :  { %v1935_v51 = vpop.eup %1934 }
0x16af   :  { %v1573_v52 = vadd.f32 1.0, %v1935_v51 }
0x16b1   :  { %1936 = vrcp.f32 %v1573_v52 }
0x16bb   :  { %v1937_v53 = vpop.eup %1936 }
0x16bc   :  { %1577 = vst.msk [vmem:[%s2207_s6] sm:$0xff] %vm1576_vm4, %v1937_v53 }

</bundles_post_ra>
